<compile_context>
chip_gen: v7x
topology: tpu7x:2x2x1
jax: 0.10.0
libtpu: 0.0.40
codegen_flags: <defaults>
</compile_context>

<pallas_src>
import functools
import math

import numpy as np
import jax
import jax.numpy as jnp
from jax.experimental import pallas as pl
from jax.experimental.pallas import tpu as pltpu


# GEMM tiling knobs.  Per-grid-step VMEM (double-buffered blocks + accumulator/epilogue
# temporaries) stays ~12-18 MB at these sizes.
_TM = 1024          # rows (B*OH*OW) per tile
_TN = 512           # output channels per tile (dense path)
_TK = 1024          # max reduction depth per K step (dense path)
_M_GRAN = 16        # bf16 sublane packing granularity for the M axis
_VMEM_LIMIT = 48 * 1024 * 1024


def _round_up(n, m):
    return (n + m - 1) // m * m


def _tile(n, t):
    """Return (padded_n, tile): tile a multiple of 16 (or == padded_n), padded_n % tile == 0."""
    n16 = _round_up(n, _M_GRAN)
    tt = min(t, n16)
    return _round_up(n16, tt), tt


# ----------------------------------------------------------------------------
# Pallas kernels
# ----------------------------------------------------------------------------
@functools.lru_cache(maxsize=None)
def _make_gemm_kernel(relu, with_res, multi_k):
    """Tiled GEMM + folded-BN (+residual) (+ReLU) epilogue.
    multi_k=True  : f32 VMEM accumulator, init/finalize gated on the K grid axis.
    multi_k=False : single K step - dot goes straight through the epilogue to o_ref."""

    def epilogue(acc, s, b, r):
        out = acc * s + b
        if with_res:
            out = out + r
        if relu:
            out = jnp.maximum(out, 0.0)
        return out

    if multi_k:
        if with_res:
            def kernel(x_ref, w_ref, s_ref, b_ref, r_ref, o_ref, acc_ref):
                @pl.when(pl.program_id(2) == 0)
                def _():
                    acc_ref[...] = jnp.zeros_like(acc_ref)

                acc_ref[...] += jnp.dot(x_ref[...], w_ref[0],
                                        preferred_element_type=jnp.float32)

                @pl.when(pl.program_id(2) == pl.num_programs(2) - 1)
                def _():
                    o_ref[...] = epilogue(acc_ref[...], s_ref[...], b_ref[...],
                                          r_ref[...].astype(jnp.float32)
                                          ).astype(o_ref.dtype)
        else:
            def kernel(x_ref, w_ref, s_ref, b_ref, o_ref, acc_ref):
                @pl.when(pl.program_id(2) == 0)
                def _():
                    acc_ref[...] = jnp.zeros_like(acc_ref)

                acc_ref[...] += jnp.dot(x_ref[...], w_ref[0],
                                        preferred_element_type=jnp.float32)

                @pl.when(pl.program_id(2) == pl.num_programs(2) - 1)
                def _():
                    o_ref[...] = epilogue(acc_ref[...], s_ref[...], b_ref[...],
                                          None).astype(o_ref.dtype)
    else:
        if with_res:
            def kernel(x_ref, w_ref, s_ref, b_ref, r_ref, o_ref):
                acc = jnp.dot(x_ref[...], w_ref[0], preferred_element_type=jnp.float32)
                o_ref[...] = epilogue(acc, s_ref[...], b_ref[...],
                                      r_ref[...].astype(jnp.float32)).astype(o_ref.dtype)
        else:
            def kernel(x_ref, w_ref, s_ref, b_ref, o_ref):
                acc = jnp.dot(x_ref[...], w_ref[0], preferred_element_type=jnp.float32)
                o_ref[...] = epilogue(acc, s_ref[...], b_ref[...], None).astype(o_ref.dtype)
    return kernel


def _max9_kernel(x_ref, o_ref):
    o_ref[...] = jnp.max(x_ref[...], axis=0)


def _gap_kernel(x_ref, o_ref):
    o_ref[...] = jnp.mean(x_ref[...].astype(jnp.float32), axis=1)


def _sal_kernel(f_ref, m_ref, o_ref, acc_ref):
    @pl.when(pl.program_id(1) == 0)
    def _():
        acc_ref[...] = jnp.zeros_like(acc_ref)

    acc_ref[...] += jnp.sum(f_ref[...].astype(jnp.float32) * m_ref[...], axis=1)

    @pl.when(pl.program_id(1) == pl.num_programs(1) - 1)
    def _():
        o_ref[...] = acc_ref[...]


# ----------------------------------------------------------------------------
# One-time weight/BN preparation (hoisted out of the per-call path)
# ----------------------------------------------------------------------------
def _prep_conv(w, scale, bias, *, groups=1, pad_cout_to=None, pad_cin_to=None):
    """Build GEMM-ready weight slabs + folded-BN scale/bias, once at param-build time.

    w: (Cout, Cin/groups, kh, kw) PyTorch layout.  Returns a dict consumed by apply_conv.
    Optional zero-padding of in/out channels (exact) lets narrow layers run lane-dense."""
    w = jnp.asarray(w)
    scale = jnp.asarray(scale)
    bias = jnp.asarray(bias)
    Cout, Cin_g, kh, kw = w.shape

    if groups == 1:
        if pad_cin_to is not None and pad_cin_to > Cin_g:
            w = jnp.pad(w, ((0, 0), (0, pad_cin_to - Cin_g), (0, 0), (0, 0)))
            Cin_g = pad_cin_to
        if pad_cout_to is not None and pad_cout_to > Cout:
            w = jnp.pad(w, ((0, pad_cout_to - Cout), (0, 0), (0, 0), (0, 0)))
            scale = jnp.pad(scale, (0, pad_cout_to - Cout))
            bias = jnp.pad(bias, (0, pad_cout_to - Cout))
            Cout = pad_cout_to
        K = Cin_g * kh * kw
        tn = min(_TN, Cout)
        assert Cout % tn == 0
        nN = Cout // tn
        wf = w.astype(jnp.bfloat16).reshape(Cout, K)          # (channel, tap) column order
        wsl = jnp.transpose(wf.T.reshape(K, nN, tn), (1, 0, 2))   # (nN, K, tn)
    else:
        G = groups
        Ng = Cout // G
        Kg = Cin_g * kh * kw
        GB = math.gcd(G, max(1, 128 // Ng))   # groups batched per lane-dense N tile
        tn = GB * Ng
        nN = G // GB
        Kslab = GB * Kg
        wf = w.astype(jnp.bfloat16)
        wg = jnp.transpose(wf.reshape(G, Ng, Kg), (0, 2, 1)).reshape(nN, GB, Kg, Ng)
        eye = jnp.eye(GB, dtype=wf.dtype)
        # block-diagonal weight slab per N tile: (nN, GB*Kg, GB*Ng)
        wsl = jnp.einsum('tgkn,gh->tgkhn', wg, eye).reshape(nN, Kslab, tn)

    s2 = scale.astype(jnp.float32).reshape(1, Cout)
    b2 = bias.astype(jnp.float32).reshape(1, Cout)
    return {"wsl": wsl, "s": s2, "b": b2,
            "kh": int(kh), "kw": int(kw), "groups": int(groups)}


# ----------------------------------------------------------------------------
# Fused Conv2d + folded-BN (+residual) (+ReLU) via im2col + tiled Pallas GEMM
# ----------------------------------------------------------------------------
@functools.partial(jax.jit, static_argnames=("kh", "kw", "stride", "pad", "groups", "relu"))
def conv_bn(x, wsl, s2, b2, residual=None, *, kh, kw, stride, pad, groups, relu):
    """x: (B,H,W,C); wsl/s2/b2: GEMM-ready slabs from _prep_conv; residual (optional):
    (B,OH,OW,Cout) added before the final ReLU inside the GEMM epilogue."""
    B, H, W, C = x.shape
    nN, Kslab, tn = wsl.shape
    Cout = s2.shape[1]
    KK = kh * kw
    K = C * KK
    OH = (H + 2 * pad - kh) // stride + 1
    OW = (W + 2 * pad - kw) // stride + 1
    M = B * OH * OW

    x = x.astype(jnp.bfloat16)

    # ---- im2col; per-pixel column order is (channel, tap) so groups stay contiguous ----
    if kh == 1 and kw == 1 and pad == 0:
        xs = x[:, ::stride, ::stride, :] if stride > 1 else x
        patches = xs.reshape(M, K)                       # pure reshape, no HBM expansion
    else:
        # TODO(synk): implicit GEMM (stream the kh*kw taps from the padded activation with
        #             manual DMA) instead of materializing the KK-times-expanded patches.
        xp = jnp.pad(x, ((0, 0), (pad, pad), (pad, pad), (0, 0))) if pad > 0 else x
        slabs = [xp[:, i:i + stride * (OH - 1) + 1:stride,
                      j:j + stride * (OW - 1) + 1:stride, :]
                 for i in range(kh) for j in range(kw)]
        patches = jnp.stack(slabs, axis=-1).reshape(M, K)

    if groups == 1:
        assert Kslab == K and nN * tn == Cout
        tk = _TK if (K > _TK and K % _TK == 0) else K
        assert K % tk == 0
        nk = K // tk
        x_index = lambda i, j, k: (i, k)
    else:
        assert nN * Kslab == K and nN * tn == Cout
        tk = Kslab                                       # block-diagonal slab: one K step
        nk = 1
        x_index = lambda i, j, k: (i, j)

    Mp, tm = _tile(M, _TM)
    # v7x megacore: keep >=2 parallel grid steps so both TensorCores get work.
    if nN == 1 and Mp // tm < 2 and Mp % (2 * _M_GRAN) == 0:
        tm = Mp // 2
    if Mp > M:
        # NOTE: padded M rows flow through the epilogue but are sliced off before return.
        patches = jnp.pad(patches, ((0, Mp - M), (0, 0)))

    in_specs = [
        pl.BlockSpec((tm, tk), x_index),
        pl.BlockSpec((1, tk, tn), lambda i, j, k: (j, k, 0)),
        pl.BlockSpec((1, tn), lambda i, j, k: (0, j)),
        pl.BlockSpec((1, tn), lambda i, j, k: (0, j)),
    ]
    args = [patches, wsl, s2, b2]
    with_res = residual is not None
    if with_res:
        res = residual.astype(jnp.bfloat16).reshape(M, Cout)
        if Mp > M:
            res = jnp.pad(res, ((0, Mp - M), (0, 0)))
        in_specs.append(pl.BlockSpec((tm, tn), lambda i, j, k: (i, j)))
        args.append(res)

    flops = 2 * M * Cout * (Kslab if groups > 1 else K)
    bytes_acc = (patches.size + wsl.size + Mp * Cout * (2 if with_res else 1)) * 2
    cost = pl.CostEstimate(flops=int(flops), transcendentals=0,
                           bytes_accessed=int(bytes_acc))

    out = pl.pallas_call(
        _make_gemm_kernel(relu, with_res, nk > 1),
        grid=(Mp // tm, Cout // tn, nk),
        in_specs=in_specs,
        out_specs=pl.BlockSpec((tm, tn), lambda i, j, k: (i, j)),
        out_shape=jax.ShapeDtypeStruct((Mp, Cout), jnp.bfloat16),
        scratch_shapes=[pltpu.VMEM((tm, tn), jnp.float32)] if nk > 1 else [],
        compiler_params=pltpu.CompilerParams(
            dimension_semantics=("parallel", "parallel", "arbitrary"),
            vmem_limit_bytes=_VMEM_LIMIT),
        cost_estimate=cost,
    )(*args)

    return out[:M].reshape(B, OH, OW, Cout)


def apply_conv(x, p, residual=None, *, stride, pad, relu):
    return conv_bn(x, p["wsl"], p["s"], p["b"], residual,
                   kh=p["kh"], kw=p["kw"], stride=stride, pad=pad,
                   groups=p["groups"], relu=relu)


# ----------------------------------------------------------------------------
# Small tiled Pallas helper ops
# ----------------------------------------------------------------------------
@jax.jit
def max_pool_3x3_s2(x):  # NHWC, kernel 3x3, stride 2, pad 1 (pad value -inf)
    B, H, W, C = x.shape
    OH = (H + 2 - 3) // 2 + 1
    OW = (W + 2 - 3) // 2 + 1
    M = B * OH * OW
    xp = jnp.pad(x, ((0, 0), (1, 1), (1, 1), (0, 0)), constant_values=-jnp.inf)
    slabs = [xp[:, i:i + 2 * (OH - 1) + 1:2, j:j + 2 * (OW - 1) + 1:2, :]
             for i in range(3) for j in range(3)]
    st = jnp.stack(slabs, axis=0).reshape(9, M, C)
    Mp, tm = _tile(M, 1024)
    if Mp > M:
        st = jnp.pad(st, ((0, 0), (0, Mp - M), (0, 0)), constant_values=-jnp.inf)
    out = pl.pallas_call(
        _max9_kernel,
        grid=(Mp // tm,),
        in_specs=[pl.BlockSpec((9, tm, C), lambda i: (0, i, 0))],
        out_specs=pl.BlockSpec((tm, C), lambda i: (i, 0)),
        out_shape=jax.ShapeDtypeStruct((Mp, C), x.dtype),
        compiler_params=pltpu.CompilerParams(dimension_semantics=("parallel",)),
    )(st)
    return out[:M].reshape(B, OH, OW, C)


@jax.jit
def global_avg_pool(x):  # (B, H, W, C) -> (B, C) float32
    B, H, W, C = x.shape
    L = H * W
    xf = x.reshape(B, L, C)
    tc = min(256, C)
    return pl.pallas_call(
        _gap_kernel,
        grid=(C // tc,),
        in_specs=[pl.BlockSpec((B, L, tc), lambda j: (0, 0, j))],
        out_specs=pl.BlockSpec((B, tc), lambda j: (0, j)),
        out_shape=jax.ShapeDtypeStruct((B, C), jnp.float32),
        compiler_params=pltpu.CompilerParams(dimension_semantics=("parallel",)),
    )(xf)


@jax.jit
def salience_pool(f, m):
    """f: (B, L, C) features; m: (B, L) mask already carrying the 1/channel_size factor."""
    B, L, C = f.shape
    f = f.astype(jnp.bfloat16)
    m = m.astype(jnp.float32).reshape(B, L, 1)
    Lp, tl = _tile(L, 512)
    if Lp > L:
        f = jnp.pad(f, ((0, 0), (0, Lp - L), (0, 0)))
        m = jnp.pad(m, ((0, 0), (0, Lp - L), (0, 0)))
    tc = min(256, C)
    return pl.pallas_call(
        _sal_kernel,
        grid=(C // tc, Lp // tl),
        in_specs=[pl.BlockSpec((B, tl, tc), lambda j, l: (0, l, j)),
                  pl.BlockSpec((B, tl, 1), lambda j, l: (0, l, 0))],
        out_specs=pl.BlockSpec((B, tc), lambda j, l: (0, j)),
        out_shape=jax.ShapeDtypeStruct((B, C), jnp.float32),
        scratch_shapes=[pltpu.VMEM((B, tc), jnp.float32)],
        compiler_params=pltpu.CompilerParams(
            dimension_semantics=("parallel", "arbitrary")),
    )(f, m)


def _bilinear_matrix(in_size, out_size):
    """Dense (out_size, in_size) bilinear-interpolation matrix, align_corners=False."""
    src = (np.arange(out_size, dtype=np.float64) + 0.5) * (in_size / out_size) - 0.5
    src = np.maximum(src, 0.0)
    i0 = np.minimum(np.floor(src), in_size - 1).astype(np.int64)
    i1 = np.minimum(i0 + 1, in_size - 1)
    w1 = src - i0
    w0 = 1.0 - w1
    mat = np.zeros((out_size, in_size), np.float32)
    rows = np.arange(out_size)
    mat[rows, i0] += w0.astype(np.float32)
    mat[rows, i1] += w1.astype(np.float32)
    return jnp.asarray(mat)


# ----------------------------------------------------------------------------
# Deterministic parameter construction (synthetic; BN folded from "running stats",
# GEMM-ready weight slabs built ONCE here, not per forward call)
# ----------------------------------------------------------------------------
_rng = np.random.default_rng(0)


def _conv_w(cout, cin_g, kh, kw):
    return jnp.asarray((0.05 * _rng.standard_normal((cout, cin_g, kh, kw))).astype(np.float32))


def _bn_fold(c):
    gamma = (1.0 + 0.1 * _rng.standard_normal(c)).astype(np.float32)
    beta = (0.1 * _rng.standard_normal(c)).astype(np.float32)
    mean = (0.1 * _rng.standard_normal(c)).astype(np.float32)
    var = _rng.uniform(0.5, 1.5, c).astype(np.float32)
    scale = gamma / np.sqrt(var + 1e-5)
    bias = beta - mean * scale
    return jnp.asarray(scale), jnp.asarray(bias)


def _make_block(cin, mid, cout, stride, downsample, pad_cin_to=None):
    p = {"stride": stride}
    s, b = _bn_fold(mid)
    p["c1"] = _prep_conv(_conv_w(mid, cin, 1, 1), s, b, pad_cin_to=pad_cin_to)
    s, b = _bn_fold(mid)
    p["c2"] = _prep_conv(_conv_w(mid, mid // 32, 3, 3), s, b, groups=32)   # 32-group conv
    s, b = _bn_fold(cout)
    p["c3"] = _prep_conv(_conv_w(cout, mid, 1, 1), s, b)
    if downsample:
        s, b = _bn_fold(cout)
        p["cd"] = _prep_conv(_conv_w(cout, cin, 1, 1), s, b, pad_cin_to=pad_cin_to)
    return p


def _make_stage(cin, mid, cout, nblocks, stride, pad_cin_to=None):
    blocks = [_make_block(cin, mid, cout, stride, True, pad_cin_to)]
    for _ in range(nblocks - 1):
        blocks.append(_make_block(cout, mid, cout, 1, False))
    return blocks


def build_params():
    params = {}
    s, b = _bn_fold(64)
    # stem Cout padded 64->128 (zero weights -> extra channels are exactly zero): lane-dense
    # stem GEMM + max-pool; stage1 block0 consumes the 128-channel input with zero-padded w.
    params["stem"] = _prep_conv(_conv_w(64, 3, 7, 7), s, b, pad_cout_to=128)
    params["stage1"] = _make_stage(64, 128, 256, 3, 1, pad_cin_to=128)
    params["stage2"] = _make_stage(256, 256, 512, 4, 2)
    params["stage3"] = _make_stage(512, 512, 1024, 23, 2)
    params["stage4"] = _make_stage(1024, 1024, 2048, 3, 2)
    return params


# ----------------------------------------------------------------------------
# Forward pass
# ----------------------------------------------------------------------------
def _block_forward(x, p):
    if "cd" in p:
        shortcut = apply_conv(x, p["cd"], stride=p["stride"], pad=0, relu=False)
    else:
        shortcut = x
    out = apply_conv(x, p["c1"], stride=1, pad=0, relu=True)
    out = apply_conv(out, p["c2"], stride=p["stride"], pad=1, relu=True)
    # third 1x1 conv: residual add + ReLU fused into the GEMM epilogue
    out = apply_conv(out, p["c3"], residual=shortcut, stride=1, pad=0, relu=True)
    return out


def forward(x_nchw, salience_masks, params):
    # layout: NCHW input (PyTorch) -> NHWC once; activations carried in bf16.
    x = jnp.transpose(x_nchw, (0, 2, 3, 1)).astype(jnp.bfloat16)

    x = apply_conv(x, params["stem"], stride=2, pad=3, relu=True)   # x0,x1,x2 (C=128 padded)
    x = max_pool_3x3_s2(x)                                          # x3
    for p in params["stage1"]:                                      # x4
        x = _block_forward(x, p)
    for p in params["stage2"]:                                      # x5
        x = _block_forward(x, p)
    for p in params["stage3"]:                                      # x6
        x = _block_forward(x, p)
    x6 = x
    for p in params["stage4"]:                                      # x7
        x = _block_forward(x, p)

    gap = global_avg_pool(x)                                        # (B, 2048) f32

    # Salience-weighted pooling of x6.  The bilinear upsample of x6 to mask resolution is
    # folded into the mask (exact: the pooling is linear), so x6 is pooled at its native
    # resolution and the (B, mh, mw, 1024) intermediate is never materialized.
    B, H6, W6, C6 = x6.shape
    mh, mw = int(salience_masks.shape[1]), int(salience_masks.shape[2])
    Wh = _bilinear_matrix(H6, mh)                                   # (mh, H6)
    Ww = _bilinear_matrix(W6, mw)                                   # (mw, W6)
    m = salience_masks.astype(jnp.float32)
    m6 = jnp.einsum('ph,bpq,qw->bhw', Wh, m, Ww) * (1.0 / float(mh * mw))
    sal_feat = salience_pool(x6.reshape(B, H6 * W6, C6), m6.reshape(B, H6 * W6))

    # TODO(synk): training-mode classifier head (nn.Linear(3072, num_classes)) not executed.
    return jnp.concatenate([gap, sal_feat], axis=1)                 # (B, 3072) f32


# ----------------------------------------------------------------------------
if __name__ == "__main__":
    # sanity check 1: grouped 3x3 stride-2 conv (lane-dense group-batched path) vs lax conv
    kx = jax.random.normal(jax.random.PRNGKey(42), (1, 8, 8, 4), jnp.float32)
    kw_ = jnp.asarray(np.random.default_rng(1).standard_normal((8, 2, 3, 3)).astype(np.float32))
    pgc = _prep_conv(kw_, jnp.ones((8,), jnp.float32), jnp.zeros((8,), jnp.float32), groups=2)
    got = apply_conv(kx, pgc, stride=2, pad=1, relu=False)
    ref = jax.lax.conv_general_dilated(
        kx.astype(jnp.bfloat16), kw_.astype(jnp.bfloat16),
        window_strides=(2, 2), padding=[(1, 1), (1, 1)],
        dimension_numbers=("NHWC", "OIHW", "NHWC"), feature_group_count=2,
        preferred_element_type=jnp.float32)
    np.testing.assert_allclose(np.asarray(got.astype(jnp.float32)), np.asarray(ref),
                               rtol=2e-2, atol=2e-2)

    # sanity check 2: dense 3x3 conv + BN + ReLU (with M padding) vs lax conv
    kx2 = jax.random.normal(jax.random.PRNGKey(7), (2, 9, 7, 16), jnp.float32)
    kw2 = jnp.asarray((0.1 * np.random.default_rng(2).standard_normal((32, 16, 3, 3))).astype(np.float32))
    sc = jnp.asarray(np.random.default_rng(3).uniform(0.5, 1.5, 32).astype(np.float32))
    bi = jnp.asarray((0.1 * np.random.default_rng(4).standard_normal(32)).astype(np.float32))
    pdc = _prep_conv(kw2, sc, bi)
    got2 = apply_conv(kx2, pdc, stride=1, pad=1, relu=True)
    ref2 = jax.lax.conv_general_dilated(
        kx2.astype(jnp.bfloat16), kw2.astype(jnp.bfloat16),
        window_strides=(1, 1), padding=[(1, 1), (1, 1)],
        dimension_numbers=("NHWC", "OIHW", "NHWC"),
        preferred_element_type=jnp.float32)
    ref2 = jnp.maximum(ref2 * sc[None, None, None, :] + bi[None, None, None, :], 0.0)
    np.testing.assert_allclose(np.asarray(got2.astype(jnp.float32)), np.asarray(ref2),
                               rtol=2e-2, atol=2e-2)

    params = build_params()

    key = jax.random.PRNGKey(0)
    k1, k2 = jax.random.split(key)
    x = jax.random.normal(k1, (2, 3, 64, 32), jnp.float32)          # small NCHW input
    salience_masks = jax.random.uniform(k2, (2, 8, 4), jnp.float32)

    feats = forward(x, salience_masks, params)
    feats = jax.block_until_ready(feats)
    assert feats.shape == (2, 3072) and feats.dtype == jnp.float32
    assert bool(jnp.all(jnp.isfinite(feats)))
    print("KERNEL_OK")
</pallas_src>

<mosaic_0001>
module attributes {stable_mosaic.version = 11 : i64} {
  func.func @kernel(%arg0: i32, %arg1: i32, %arg2: i32, %arg3: memref<16x36xbf16, #tpu.memory_space<vmem>>, %arg4: memref<1x36x8xbf16, #tpu.memory_space<vmem>>, %arg5: memref<1x8xf32, #tpu.memory_space<vmem>>, %arg6: memref<1x8xf32, #tpu.memory_space<vmem>>, %arg7: memref<16x8xbf16, #tpu.memory_space<vmem>>) attributes {dimension_semantics = [#tpu.dimension_semantics<parallel>, #tpu.dimension_semantics<parallel>, #tpu.dimension_semantics<arbitrary>], iteration_bounds = array<i64: 1, 1, 1>, scalar_prefetch = 0 : i64, scratch_operands = 0 : i64, tpu.core_type = #tpu.core_type<tc>, window_params = [{transform_indices = @transform_0, window_bounds = array<i64: 16, 36>}, {transform_indices = @transform_1, window_bounds = array<i64: 1, 36, 8>}, {transform_indices = @transform_2, window_bounds = array<i64: 1, 8>}, {transform_indices = @transform_3, window_bounds = array<i64: 1, 8>}, {transform_indices = @transform_4, window_bounds = array<i64: 16, 8>}]} {
    %c0 = arith.constant 0 : index
    %c0_0 = arith.constant 0 : index
    %0 = vector.load %arg3[%c0, %c0_0] : memref<16x36xbf16, #tpu.memory_space<vmem>>, vector<16x36xbf16>
    %c0_1 = arith.constant 0 : index
    %c0_2 = arith.constant 0 : index
    %c0_3 = arith.constant 0 : index
    %1 = vector.load %arg4[%c0_1, %c0_2, %c0_3] : memref<1x36x8xbf16, #tpu.memory_space<vmem>>, vector<1x36x8xbf16>
    %2 = vector.shape_cast %1 : vector<1x36x8xbf16> to vector<36x8xbf16>
    %cst = arith.constant dense<0.000000e+00> : vector<16x8xf32>
    %3 = tpu.matmul %0, %2, %cst {dimension_numbers = #tpu.dot_dimension_numbers<[1], [0], [0], [1], [0, 0, 1, 1], [], []>} : vector<16x36xbf16>, vector<36x8xbf16>, vector<16x8xf32> -> vector<16x8xf32>
    %c0_4 = arith.constant 0 : index
    %c0_5 = arith.constant 0 : index
    %4 = vector.load %arg5[%c0_4, %c0_5] : memref<1x8xf32, #tpu.memory_space<vmem>>, vector<1x8xf32>
    %c0_6 = arith.constant 0 : index
    %c0_7 = arith.constant 0 : index
    %5 = vector.load %arg6[%c0_6, %c0_7] : memref<1x8xf32, #tpu.memory_space<vmem>>, vector<1x8xf32>
    %6 = vector.broadcast %4 : vector<1x8xf32> to vector<16x8xf32>
    %7 = arith.mulf %3, %6 : vector<16x8xf32>
    %8 = vector.broadcast %5 : vector<1x8xf32> to vector<16x8xf32>
    %9 = arith.addf %7, %8 : vector<16x8xf32>
    %10 = arith.truncf %9 : vector<16x8xf32> to vector<16x8xbf16>
    %c0_8 = arith.constant 0 : index
    %c0_9 = arith.constant 0 : index
    %11 = vector.load %arg7[%c0_8, %c0_9] : memref<16x8xbf16, #tpu.memory_space<vmem>>, vector<16x8xbf16>
    tpu.vector_store %arg7[%c0_8, %c0_9], %10 {strides = array<i32>} : memref<16x8xbf16, #tpu.memory_space<vmem>>, vector<16x8xbf16>,
    return
  }
  func.func @transform_0(%arg0: i32, %arg1: i32, %arg2: i32) -> (i32, i32) {
    %c0_i32 = arith.constant 0 : i32
    return %arg0, %arg1 : i32, i32
  }
  func.func @transform_1(%arg0: i32, %arg1: i32, %arg2: i32) -> (i32, i32, i32) {
    %c0_i32 = arith.constant 0 : i32
    %c0_i32_0 = arith.constant 0 : i32
    return %arg1, %arg2, %c0_i32 : i32, i32, i32
  }
  func.func @transform_2(%arg0: i32, %arg1: i32, %arg2: i32) -> (i32, i32) {
    %c0_i32 = arith.constant 0 : i32
    %c0_i32_0 = arith.constant 0 : i32
    return %c0_i32, %arg1 : i32, i32
  }
  func.func @transform_3(%arg0: i32, %arg1: i32, %arg2: i32) -> (i32, i32) {
    %c0_i32 = arith.constant 0 : i32
    %c0_i32_0 = arith.constant 0 : i32
    return %c0_i32, %arg1 : i32, i32
  }
  func.func @transform_4(%arg0: i32, %arg1: i32, %arg2: i32) -> (i32, i32) {
    %c0_i32 = arith.constant 0 : i32
    return %arg0, %arg1 : i32, i32
  }
}

</mosaic_0001>

<bundles_post_ra>
// kernel: conv_bn.1
= control target key start
LH: loop header
LB: loop body
LE: loop exit
PB: predicated region body
PF: predicated region fallthrough
CT: control target
= control target key end

     0   :  { %v198_v1 = vmov 0.0   ;;  %vm199_vm0 = vmmov 0   ;;  %vm50_vm1 = vcmask 1041408   ;;  %s258_s0 = inlined_call_operand.vmem [shape: bf16[16,36], index: 0, kind: input, shape index: {}]   ;;  %s259_s1 = inlined_call_operand.vmem [shape: bf16[1,36,8], index: 1, kind: input, shape index: {}]   ;;  %s260_s2 = inlined_call_operand.vmem [shape: f32[1,8], index: 2, kind: input, shape index: {}]   ;;  %s261_s3 = inlined_call_operand.vmem [shape: f32[1,8], index: 3, kind: input, shape index: {}]   ;;  %s262_s4 = inlined_call_operand.hbm [shape: bf16[16,8], index: 4, kind: output, shape index: {}]  }
   0x1   :  { %v170_v0 = vld [vmem:[%s259_s1] sm:$0xff]   ;;  %155 = vmatprep.subr.bf16.mxu0 %v198_v1  ;;  %v171_v2 = vld [vmem:[%s259_s1 + $0x8] sm:$0xff]   ;;  %v172_v3 = vld [vmem:[%s259_s1 + $0x10] ss:$0 sps:$4 sm:$0x33]   ;;  %161 = vmatprep.mubr.msk.bf16.mxu0 %vm199_vm0, %v198_v1 }
   0x2   :  { %156 = vmatpush3.bf16.msra.mxu0 %v170_v0 }
   0x3   :  { %157 = vmatprep.subr.bf16.mxu0 %v198_v1 }
   0x4   :  { %9 = vsyncpa [#allocation3], 0  ;;  %v52_v4 = vsel %vm50_vm1, %v172_v3, 0  ;;  %v173_v5 = vld [vmem:[%s258_s0] sm:$0xff]   ;;  %vm46_vm2 = vcmask 293888   ;;  %s200_s26 = smov [#allocation2]  }
   0x5   :  { %v145_v6 = vld [vmem:[%s260_s2] ss:$0 sm:$0xff]  ;;  %s129_s0 = sshll.u32 %s200_s26, 4  ;;  %vm121_vm3 = vcmask 60416   ;;  %s130_s0 = int_to_ptr.vmem [resolvable:$true] %s129_s0 }
   0x6   :  { %158 = vmatpush3.bf16.msra.mxu0 %v171_v2  ;;  %v146_v8 = vld [vmem:[%s261_s3] ss:$0 sm:$0xff]  ;;  %s174_s2 = scalar_lea.vmem %s130_s0, 128  ;;  %p179_p1 = scmp.lt.s32.totalorder %s130_s0, %s130_s0 }
   0x7   :  { %159 = vmatprep.subr.bf16.mxu0 %v198_v1  ;;  %p175_p0 = scmp.ne.s32.totalorder %s130_s0, %s174_s2  ;;  %p180_p2 = scmp.lt.s32.totalorder %s174_s2, %s174_s2 }
   0x9   :  { %p181_p3 = por %p180_p2, %p179_p1 }
   0xa   :  { %160 = vmatpush3.bf16.msra.mxu0 %v52_v4 }
   0xb   :  { %p182_p4 = pnand %p181_p3, %p175_p0 }
   0xd   :  { %162 = vmatmul.mubr.msk.bf16.vlgmr.msra.gmra.mrb[0].mxu0 %vm46_vm2, %v173_v5 }
  0xe0   :  { %v88_v7 = vpop.f32.mrb[0].mxu0 }
  0xe1   :  { %v103_v9 = vmul.f32 %v145_v6, %v88_v7  ;;  %v163_v10 = vpop.f32.mrb[1].mxu0 }
  0xe2   :  { %v91_v11 = vpop.f32.mrb[2].mxu0 }
  0xe3   :  { %v111_v12 = vadd.f32 %v146_v8, %v103_v9  ;;  %v104_v13 = vmul.f32 %v145_v6, %v91_v11  ;;  %v164_v14 = vpop.f32.mrb[3].mxu0 }
  0xe5   :  { %v149_v15 = vpack.c.bf16 %v111_v12, %v111_v12  ;;  %v112_v16 = vadd.f32 %v146_v8, %v104_v13 }
  0xe7   :  { %122 = vst.msk [vmem:[#allocation2] sm:$0xf] %vm121_vm3, %v149_v15  ;;  %v150_v17 = vpack.c.bf16 %v112_v16, %v112_v16 }
  0xe9   :  { %123 = vst.msk [vmem:[#allocation2 + $0x4] sm:$0xf] %vm121_vm3, %v150_v17 }
  0xea   :  { %185 = shalt.err (!%p182_p4)
}
  0xeb   :  { %s186_s28 = scalar_lea.hbm %s262_s4, 128 }
  0xec   :  { %p187_p5 = scmp.ne.s32.totalorder %s262_s4, %s186_s28  ;;  %p190_p6 = scmp.lt.u32.totalorder %s186_s28, %s262_s4 }
  0xee   :  { %p192_p7 = pnand %p190_p6, %p187_p5 }
  0xf0   :  { %195 = shalt.err (!%p192_p7)
}
  0xf1   :  { %s201_s7 = smov 64   ;;  %s202_s8 = smov 4  }
  0xf2   :  { %135 = dma.vmem_to_hbm [thread:$0]  %s130_s0, 128, %s262_s4, [#allocation3], %s201_s7, %s201_s7, %s202_s8  }
  0xf3   :  { %196 = dma.done.wait [#allocation3], 128  }
  0xf4   :  { %197 = vsyncadd [#allocation3], 4294967168 }
  0xf5   :  { %139 = vsyncpa [#allocation3], 1 }

</bundles_post_ra>
